<compile_context>
chip_gen: v7x
topology: tpu7x:2x2x1
jax: 0.10.0
libtpu: 0.0.40
codegen_flags: <defaults>
</compile_context>

<pallas_src>
import numpy as np
import jax
import jax.numpy as jnp
from jax import lax
from jax.experimental import pallas as pl
from jax.experimental.pallas import tpu as pltpu


def _round_up(a, b):
    return (a + b - 1) // b * b


def _tree_sum(chunks):
    """Pairwise tree-sum of a list of equally-shaped arrays (good ILP)."""
    while len(chunks) > 1:
        nxt = [a + b for a, b in zip(chunks[0::2], chunks[1::2])]
        if len(chunks) % 2:
            nxt.append(chunks[-1])
        chunks = nxt
    return chunks[0]


def _make_kernel(tm):
    assert tm % 128 == 0 and tm >= 128

    def kernel(ib_ref, jb_ref, xi_ref, xj_ref, yi_ref, yj_ref, out_ref):
        t = pl.program_id(0)
        # Upper-triangle enumeration: off-diagonal block pairs of the
        # symmetric Gram matrices are visited once and counted twice.
        w = jnp.where(ib_ref[t] == jb_ref[t], jnp.float32(1.0), jnp.float32(2.0))

        # A @ B.T by contracting the LAST dim of both operands (no explicit
        # transpose / XLU relayout).  Inputs are pre-normalized (and possibly
        # bf16); accumulation is f32 on the MXU.
        dn = (((1,), (1,)), ((), ()))
        sx = lax.dot_general(xi_ref[...], xj_ref[...], dn,
                             preferred_element_type=jnp.float32)
        sy = lax.dot_general(yi_ref[...], yj_ref[...], dn,
                             preferred_element_type=jnp.float32)
        d = sx - sy
        dd = d * d

        # Fold (tm, tm) -> (8, 128) with vreg-aligned slices and pure VPU adds.
        rows = _tree_sum([dd[r * 8:(r + 1) * 8, :] for r in range(tm // 8)])
        p = _tree_sum([rows[:, c * 128:(c + 1) * 128] for c in range(tm // 128)])

        out_ref[0] = w * p  # per-step partial sum (reduced to scalar in XLA)

    return kernel


def _normalize_rows(z):
    zf = z.astype(jnp.float32)
    return zf * lax.rsqrt(jnp.sum(zf * zf, axis=-1, keepdims=True)
                          + jnp.float32(1e-8))


def _vmem_budget_bytes():
    try:
        cap = int(pltpu.get_tpu_info().vmem_capacity_bytes)
    except Exception:
        cap = 64 * 1024 * 1024  # assume the smallest (v7x) if the query fails
    return int(cap * 3 // 4)    # leave headroom for Mosaic internal scratch


def _est_vmem_bytes(tm, d, in_bytes):
    inputs = 4 * 2 * tm * d * in_bytes   # 4 (tm, d) input tiles, double-buffered
    temps = 4 * tm * tm * 4              # sx, sy, d, d*d (f32)
    return inputs + temps + (2 << 20)    # + output tile / misc headroom


def enforcer(x, y, *, block_m=512, use_bf16_matmul=True):
    """MSELoss(cos_sim_matrix(x), cos_sim_matrix(y)) as one tiled Pallas call."""
    assert x.shape == y.shape and x.ndim == 2
    n, d = x.shape

    # Normalize rows ONCE outside the kernel; cast to the matmul input dtype.
    cdtype = jnp.bfloat16 if use_bf16_matmul else jnp.float32
    xn = _normalize_rows(x).astype(cdtype)
    yn = _normalize_rows(y).astype(cdtype)
    in_bytes = 2 if use_bf16_matmul else 4

    budget = _vmem_budget_bytes()
    tm_cap = min(int(block_m), _round_up(n, 128))
    tm_cap = max(128, _round_up(tm_cap, 128))
    tm = 128
    for cand in (512, 384, 256, 128):
        if cand <= tm_cap and _est_vmem_bytes(cand, d, in_bytes) <= budget:
            tm = cand
            break

    n_pad = _round_up(n, tm)
    if n_pad != n:
        # Zero rows normalize to the zero vector -> zero Gram entries in BOTH
        # matrices -> contribute exactly 0 to the squared-difference sum.
        pad = ((0, n_pad - n), (0, 0))
        xn = jnp.pad(xn, pad)
        yn = jnp.pad(yn, pad)
    nb = n_pad // tm

    # Upper-triangular block enumeration: nb*(nb+1)/2 steps instead of nb^2.
    # Row-major order keeps the i-tiles resident across the inner j sweep.
    iu, ju = np.triu_indices(nb)
    ib = jnp.asarray(iu, dtype=jnp.int32)
    jb = jnp.asarray(ju, dtype=jnp.int32)
    nt = int(iu.shape[0])

    row_i = pl.BlockSpec((tm, d), lambda t, ibr, jbr: (ibr[t], 0))
    row_j = pl.BlockSpec((tm, d), lambda t, ibr, jbr: (jbr[t], 0))
    out_spec = pl.BlockSpec((1, 8, 128), lambda t, ibr, jbr: (t, 0, 0))

    grid_spec = pltpu.PrefetchScalarGridSpec(
        num_scalar_prefetch=2,
        grid=(nt,),
        in_specs=[row_i, row_j, row_i, row_j],
        out_specs=out_spec,
    )

    partials = pl.pallas_call(
        _make_kernel(tm),
        out_shape=jax.ShapeDtypeStruct((nt, 8, 128), jnp.float32),
        grid_spec=grid_spec,
        compiler_params=pltpu.CompilerParams(
            dimension_semantics=("parallel",),
            vmem_limit_bytes=budget,
        ),
    )(ib, jb, xn, xn, yn, yn)

    # Final reduction + mean scale (uses the TRUE, unpadded N).
    return jnp.sum(partials) * jnp.float32(1.0 / (n * n))


def _enforcer_ref(x, y):
    """float64 numpy reference (gold)."""
    x = np.asarray(x, dtype=np.float64)
    y = np.asarray(y, dtype=np.float64)

    def sim(z):
        zn = z / np.sqrt((z * z).sum(axis=-1, keepdims=True) + 1e-8)
        return zn @ zn.T

    dxy = sim(x) - sim(y)
    return (dxy * dxy).mean()


if __name__ == "__main__":
    key = jax.random.PRNGKey(0)
    kx, ky, kx2, ky2, kx3, ky3 = jax.random.split(key, 6)

    # Small shapes consistent with the module: 8 samples, 32-d embeddings.
    N, D = 8, 32
    x = jax.random.normal(kx, (N, D), dtype=jnp.float32)
    y = jax.random.normal(ky, (N, D), dtype=jnp.float32)
    ref = _enforcer_ref(x, y)
    out_f32 = jax.block_until_ready(enforcer(x, y, use_bf16_matmul=False))
    assert np.allclose(np.asarray(out_f32), ref, rtol=1e-4, atol=1e-6), (out_f32, ref)
    out_bf16 = jax.block_until_ready(enforcer(x, y))  # bf16 default, looser tol
    assert np.allclose(np.asarray(out_bf16), ref, rtol=5e-2, atol=1e-4), (out_bf16, ref)

    # Larger, non-divisible N with block_m=128: exercises zero padding and the
    # multi-block triangular grid (diagonal weight 1, off-diagonal weight 2).
    N2, D2 = 200, 64
    x2 = jax.random.normal(kx2, (N2, D2), dtype=jnp.float32)
    y2 = jax.random.normal(ky2, (N2, D2), dtype=jnp.float32)
    ref2 = _enforcer_ref(x2, y2)
    out2_f32 = jax.block_until_ready(
        enforcer(x2, y2, block_m=128, use_bf16_matmul=False))
    assert np.allclose(np.asarray(out2_f32), ref2, rtol=1e-4, atol=1e-6), (out2_f32, ref2)
    out2_bf16 = jax.block_until_ready(enforcer(x2, y2, block_m=128))
    assert np.allclose(np.asarray(out2_bf16), ref2, rtol=5e-2, atol=1e-4), (out2_bf16, ref2)

    # Default (auto) tile-size path, non-multiple-of-128 feature dim.
    N3, D3 = 300, 48
    x3 = jax.random.normal(kx3, (N3, D3), dtype=jnp.float32)
    y3 = jax.random.normal(ky3, (N3, D3), dtype=jnp.float32)
    ref3 = _enforcer_ref(x3, y3)
    out3 = jax.block_until_ready(enforcer(x3, y3))
    assert np.allclose(np.asarray(out3), ref3, rtol=5e-2, atol=1e-4), (out3, ref3)

    print("KERNEL_OK")
</pallas_src>

<mosaic_0001>
module attributes {stable_mosaic.version = 11 : i64} {
  func.func @kernel(%arg0: i32, %arg1: memref<1xi32, #tpu.memory_space<smem>>, %arg2: memref<1xi32, #tpu.memory_space<smem>>, %arg3: memref<128x32xf32, #tpu.memory_space<vmem>>, %arg4: memref<128x32xf32, #tpu.memory_space<vmem>>, %arg5: memref<128x32xf32, #tpu.memory_space<vmem>>, %arg6: memref<128x32xf32, #tpu.memory_space<vmem>>, %arg7: memref<1x8x128xf32, #tpu.memory_space<vmem>>) attributes {dimension_semantics = [#tpu.dimension_semantics<parallel>], iteration_bounds = array<i64: 1>, scalar_prefetch = 2 : i64, scratch_operands = 0 : i64, tpu.core_type = #tpu.core_type<tc>, window_params = [{transform_indices = @transform_0, window_bounds = array<i64: 128, 32>}, {transform_indices = @transform_1, window_bounds = array<i64: 128, 32>}, {transform_indices = @transform_2, window_bounds = array<i64: 128, 32>}, {transform_indices = @transform_3, window_bounds = array<i64: 128, 32>}, {transform_indices = @transform_4, window_bounds = array<i64: 1, 8, 128>}]} {
    %0 = arith.index_cast %arg0 : i32 to index
    %1 = memref.load %arg1[%0] : memref<1xi32, #tpu.memory_space<smem>>
    %2 = arith.index_cast %arg0 : i32 to index
    %3 = memref.load %arg2[%2] : memref<1xi32, #tpu.memory_space<smem>>
    %4 = arith.cmpi eq, %1, %3 : i32
    %cst = arith.constant 1.000000e+00 : f32
    %cst_0 = arith.constant 2.000000e+00 : f32
    %5 = arith.select %4, %cst, %cst_0 : f32
    %c0 = arith.constant 0 : index
    %c0_1 = arith.constant 0 : index
    %6 = vector.load %arg3[%c0, %c0_1] : memref<128x32xf32, #tpu.memory_space<vmem>>, vector<128x32xf32>
    %c0_2 = arith.constant 0 : index
    %c0_3 = arith.constant 0 : index
    %7 = vector.load %arg4[%c0_2, %c0_3] : memref<128x32xf32, #tpu.memory_space<vmem>>, vector<128x32xf32>
    %cst_4 = arith.constant dense<0.000000e+00> : vector<128x128xf32>
    %8 = tpu.matmul %6, %7, %cst_4 {dimension_numbers = #tpu.dot_dimension_numbers<[1], [1], [0], [0], [0, 0, 1, 0], [], []>} : vector<128x32xf32>, vector<128x32xf32>, vector<128x128xf32> -> vector<128x128xf32>
    %c0_5 = arith.constant 0 : index
    %c0_6 = arith.constant 0 : index
    %9 = vector.load %arg5[%c0_5, %c0_6] : memref<128x32xf32, #tpu.memory_space<vmem>>, vector<128x32xf32>
    %c0_7 = arith.constant 0 : index
    %c0_8 = arith.constant 0 : index
    %10 = vector.load %arg6[%c0_7, %c0_8] : memref<128x32xf32, #tpu.memory_space<vmem>>, vector<128x32xf32>
    %cst_9 = arith.constant dense<0.000000e+00> : vector<128x128xf32>
    %11 = tpu.matmul %9, %10, %cst_9 {dimension_numbers = #tpu.dot_dimension_numbers<[1], [1], [0], [0], [0, 0, 1, 0], [], []>} : vector<128x32xf32>, vector<128x32xf32>, vector<128x128xf32> -> vector<128x128xf32>
    %12 = arith.subf %8, %11 : vector<128x128xf32>
    %13 = arith.mulf %12, %12 : vector<128x128xf32>
    %14 = vector.extract_strided_slice %13 {offsets = [0, 0], sizes = [8, 128], strides = [1, 1]} : vector<128x128xf32> to vector<8x128xf32>
    %15 = vector.extract_strided_slice %13 {offsets = [8, 0], sizes = [8, 128], strides = [1, 1]} : vector<128x128xf32> to vector<8x128xf32>
    %16 = vector.extract_strided_slice %13 {offsets = [16, 0], sizes = [8, 128], strides = [1, 1]} : vector<128x128xf32> to vector<8x128xf32>
    %17 = vector.extract_strided_slice %13 {offsets = [24, 0], sizes = [8, 128], strides = [1, 1]} : vector<128x128xf32> to vector<8x128xf32>
    %18 = vector.extract_strided_slice %13 {offsets = [32, 0], sizes = [8, 128], strides = [1, 1]} : vector<128x128xf32> to vector<8x128xf32>
    %19 = vector.extract_strided_slice %13 {offsets = [40, 0], sizes = [8, 128], strides = [1, 1]} : vector<128x128xf32> to vector<8x128xf32>
    %20 = vector.extract_strided_slice %13 {offsets = [48, 0], sizes = [8, 128], strides = [1, 1]} : vector<128x128xf32> to vector<8x128xf32>
    %21 = vector.extract_strided_slice %13 {offsets = [56, 0], sizes = [8, 128], strides = [1, 1]} : vector<128x128xf32> to vector<8x128xf32>
    %22 = vector.extract_strided_slice %13 {offsets = [64, 0], sizes = [8, 128], strides = [1, 1]} : vector<128x128xf32> to vector<8x128xf32>
    %23 = vector.extract_strided_slice %13 {offsets = [72, 0], sizes = [8, 128], strides = [1, 1]} : vector<128x128xf32> to vector<8x128xf32>
    %24 = vector.extract_strided_slice %13 {offsets = [80, 0], sizes = [8, 128], strides = [1, 1]} : vector<128x128xf32> to vector<8x128xf32>
    %25 = vector.extract_strided_slice %13 {offsets = [88, 0], sizes = [8, 128], strides = [1, 1]} : vector<128x128xf32> to vector<8x128xf32>
    %26 = vector.extract_strided_slice %13 {offsets = [96, 0], sizes = [8, 128], strides = [1, 1]} : vector<128x128xf32> to vector<8x128xf32>
    %27 = vector.extract_strided_slice %13 {offsets = [104, 0], sizes = [8, 128], strides = [1, 1]} : vector<128x128xf32> to vector<8x128xf32>
    %28 = vector.extract_strided_slice %13 {offsets = [112, 0], sizes = [8, 128], strides = [1, 1]} : vector<128x128xf32> to vector<8x128xf32>
    %29 = vector.extract_strided_slice %13 {offsets = [120, 0], sizes = [8, 128], strides = [1, 1]} : vector<128x128xf32> to vector<8x128xf32>
    %30 = arith.addf %14, %15 : vector<8x128xf32>
    %31 = arith.addf %16, %17 : vector<8x128xf32>
    %32 = arith.addf %18, %19 : vector<8x128xf32>
    %33 = arith.addf %20, %21 : vector<8x128xf32>
    %34 = arith.addf %22, %23 : vector<8x128xf32>
    %35 = arith.addf %24, %25 : vector<8x128xf32>
    %36 = arith.addf %26, %27 : vector<8x128xf32>
    %37 = arith.addf %28, %29 : vector<8x128xf32>
    %38 = arith.addf %30, %31 : vector<8x128xf32>
    %39 = arith.addf %32, %33 : vector<8x128xf32>
    %40 = arith.addf %34, %35 : vector<8x128xf32>
    %41 = arith.addf %36, %37 : vector<8x128xf32>
    %42 = arith.addf %38, %39 : vector<8x128xf32>
    %43 = arith.addf %40, %41 : vector<8x128xf32>
    %44 = arith.addf %42, %43 : vector<8x128xf32>
    %45 = vector.broadcast %5 : f32 to vector<8x128xf32>
    %46 = arith.mulf %45, %44 : vector<8x128xf32>
    %c0_10 = arith.constant 0 : index
    %c0_11 = arith.constant 0 : index
    %c0_12 = arith.constant 0 : index
    %47 = vector.load %arg7[%c0_10, %c0_11, %c0_12] : memref<1x8x128xf32, #tpu.memory_space<vmem>>, vector<1x8x128xf32>
    %48 = vector.shape_cast %47 : vector<1x8x128xf32> to vector<8x128xf32>
    %49 = vector.shape_cast %46 : vector<8x128xf32> to vector<1x8x128xf32>
    tpu.vector_store %arg7[%c0_10, %c0_11, %c0_12], %49 {strides = array<i32>} : memref<1x8x128xf32, #tpu.memory_space<vmem>>, vector<1x8x128xf32>,
    return
  }
  func.func @transform_0(%arg0: i32, %arg1: memref<1xi32, #tpu.memory_space<smem>>, %arg2: memref<1xi32, #tpu.memory_space<smem>>) -> (i32, i32) {
    %0 = arith.index_cast %arg0 : i32 to index
    %1 = memref.load %arg1[%0] : memref<1xi32, #tpu.memory_space<smem>>
    %c0_i32 = arith.constant 0 : i32
    %c0_i32_0 = arith.constant 0 : i32
    return %1, %c0_i32 : i32, i32
  }
  func.func @transform_1(%arg0: i32, %arg1: memref<1xi32, #tpu.memory_space<smem>>, %arg2: memref<1xi32, #tpu.memory_space<smem>>) -> (i32, i32) {
    %0 = arith.index_cast %arg0 : i32 to index
    %1 = memref.load %arg2[%0] : memref<1xi32, #tpu.memory_space<smem>>
    %c0_i32 = arith.constant 0 : i32
    %c0_i32_0 = arith.constant 0 : i32
    return %1, %c0_i32 : i32, i32
  }
  func.func @transform_2(%arg0: i32, %arg1: memref<1xi32, #tpu.memory_space<smem>>, %arg2: memref<1xi32, #tpu.memory_space<smem>>) -> (i32, i32) {
    %0 = arith.index_cast %arg0 : i32 to index
    %1 = memref.load %arg1[%0] : memref<1xi32, #tpu.memory_space<smem>>
    %c0_i32 = arith.constant 0 : i32
    %c0_i32_0 = arith.constant 0 : i32
    return %1, %c0_i32 : i32, i32
  }
  func.func @transform_3(%arg0: i32, %arg1: memref<1xi32, #tpu.memory_space<smem>>, %arg2: memref<1xi32, #tpu.memory_space<smem>>) -> (i32, i32) {
    %0 = arith.index_cast %arg0 : i32 to index
    %1 = memref.load %arg2[%0] : memref<1xi32, #tpu.memory_space<smem>>
    %c0_i32 = arith.constant 0 : i32
    %c0_i32_0 = arith.constant 0 : i32
    return %1, %c0_i32 : i32, i32
  }
  func.func @transform_4(%arg0: i32, %arg1: memref<1xi32, #tpu.memory_space<smem>>, %arg2: memref<1xi32, #tpu.memory_space<smem>>) -> (i32, i32, i32) {
    %c0_i32 = arith.constant 0 : i32
    %c0_i32_0 = arith.constant 0 : i32
    %c0_i32_1 = arith.constant 0 : i32
    return %arg0, %c0_i32, %c0_i32_0 : i32, i32, i32
  }
}

</mosaic_0001>

<bundles_post_ra>
// kernel: tpu_custom_call.1
= control target key start
LH: loop header
LB: loop body
LE: loop exit
PB: predicated region body
PF: predicated region fallthrough
CT: control target
= control target key end

     0   :  { %s1364_s0 = inlined_call_operand.<no memory space> [shape: s32[1], index: 0, kind: input, shape index: {}]   ;;  %s1365_s1 = inlined_call_operand.<no memory space> [shape: s32[1], index: 1, kind: input, shape index: {}]   ;;  %s1366_s2 = inlined_call_operand.vmem [shape: f32[128,32], index: 2, kind: input, shape index: {}]   ;;  %s1367_s3 = inlined_call_operand.vmem [shape: f32[128,32], index: 3, kind: input, shape index: {}]   ;;  %s1368_s4 = inlined_call_operand.vmem [shape: f32[128,32], index: 4, kind: input, shape index: {}]   ;;  %s1369_s5 = inlined_call_operand.vmem [shape: f32[128,32], index: 5, kind: input, shape index: {}]   ;;  %s1370_s6 = inlined_call_operand.hbm [shape: f32[1,8,128], index: 6, kind: output, shape index: {}]  }
   0x1   :  { %s751_s23 = sshll.u32 %s1365_s1, 4  ;;  %s749_s26 = sshll.u32 %s1364_s0, 4 }
   0x2   :  { %13 = vsyncpa [#allocation6], 0  ;;  %p88_p0 = scmp.lt.s32.totalorder %s751_s23, 15  ;;  %p80_p1 = scmp.lt.s32.totalorder %s749_s26, 15  ;;  %vm146_vm0 = vcmask 261120  }
   0x3   :  { %vm1167_vm1 = vmpackc.low %vm146_vm0, %vm146_vm0  ;;  %p112_p2 = scmp.eq.s32.totalorder %s1364_s0, %s1365_s1  ;;  %s1118_s18 = smov [#allocation5]  }
   0x4   :  { %s1374_s23 = smov (!%p88_p0, %s751_s23), 15  ;;  %s1376_s26 = smov (!%p80_p1, %s749_s26), 15 }
   0x5   :  { %s752_s27 = sshll.u32 %s1374_s23, 3  ;;  %s717_s19 = sshll.u32 %s1118_s18, 4  ;;  %s718_s19 = int_to_ptr.vmem [resolvable:$true] %s717_s19 }
   0x6   :  { %s1163_s30 = scalar_lea.vmem %s1367_s3, %s752_s27  ;;  %s1174_s9 = scalar_lea.vmem %s1369_s5, %s752_s27 }
   0x7   :  { %v130_v1 = vld [vmem:[%s1163_s30] sm:$0xff]  ;;  %v131_v2 = vld [vmem:[%s1163_s30 + $0x8] sm:$0xff]  ;;  %v132_v6 = vld [vmem:[%s1163_s30 + $0x10] sm:$0xff]  ;;  %s750_s3 = sshll.u32 %s1376_s26, 3  ;;  %s1094_s20 = scalar_lea.vmem %s718_s19, 128 }
   0x8   :  { %v404_v3 = vld [vmem:[%s1174_s9] sm:$0xff]  ;;  %v997_v4 = vpack.c.bf16 %v131_v2, %v130_v1  ;;  %v405_v5 = vld [vmem:[%s1174_s9 + $0x8] sm:$0xff]  ;;  %v133_v7 = vld [vmem:[%s1163_s30 + $0x18] sm:$0xff]  ;;  %s1203_s11 = scalar_lea.vmem %s1366_s2, %s750_s3  ;;  %s1208_s14 = scalar_lea.vmem %s1368_s4, %s750_s3 }
   0x9   :  { %v1045_v8 = vpack.c.bf16 %v405_v5, %v404_v3  ;;  %v1003_v9 = vpack.c.bf16 %v133_v7, %v132_v6  ;;  %v406_v10 = vld [vmem:[%s1174_s9 + $0x10] sm:$0xff]  ;;  %v407_v11 = vld [vmem:[%s1174_s9 + $0x18] sm:$0xff]  ;;  %v134_v13 = vld [vmem:[%s1163_s30 + $0x20] sm:$0xff]  ;;  %s113_s17 = scalar_select %p112_p2, 1.0, 2.0 }
   0xa   :  { %999 = vmatprep.subr.msk.bf16.mxu0 %vm1167_vm1, %v997_v4  ;;  %v1051_v12 = vpack.c.bf16 %v407_v11, %v406_v10  ;;  %v135_v14 = vld [vmem:[%s1163_s30 + $0x28] sm:$0xff]  ;;  %v408_v15 = vld [vmem:[%s1174_s9 + $0x20] sm:$0xff]  ;;  %v136_v21 = vld [vmem:[%s1163_s30 + $0x30] sm:$0xff]  ;;  %p1095_p3 = scmp.ne.s32.totalorder %s718_s19, %s1094_s20  ;;  %p1099_p4 = scmp.lt.s32.totalorder %s718_s19, %s718_s19 }
   0xb   :  { %1047 = vmatprep.subr.msk.bf16.mxu1 %vm1167_vm1, %v1045_v8  ;;  %1002 = vmatpush3.bf16.xpose.msk.msra.mxu0 %vm1167_vm1, %v997_v4  ;;  %v409_v16 = vld [vmem:[%s1174_s9 + $0x28] sm:$0xff]  ;;  %v1009_v17 = vpack.c.bf16 %v135_v14, %v134_v13  ;;  %v114_v19 = vld [vmem:[%s1203_s11] sm:$0xff]  ;;  %v137_v22 = vld [vmem:[%s1163_s30 + $0x38] sm:$0xff]  ;;  %p1100_p5 = scmp.lt.s32.totalorder %s1094_s20, %s1094_s20 }
   0xc   :  { %1050 = vmatpush3.bf16.xpose.msk.msra.mxu1 %vm1167_vm1, %v1045_v8  ;;  %1005 = vmatprep.subr.msk.bf16.mxu0 %vm1167_vm1, %v1003_v9  ;;  %v1057_v18 = vpack.c.bf16 %v409_v16, %v408_v15  ;;  %v388_v20 = vld [vmem:[%s1208_s14] sm:$0xff]  ;;  %v410_v23 = vld [vmem:[%s1174_s9 + $0x30] sm:$0xff]  ;;  %v411_v24 = vld [vmem:[%s1174_s9 + $0x38] sm:$0xff]  ;;  %v1015_v25 = vpack.c.bf16 %v137_v22, %v136_v21 }
   0xd   :  { %1053 = vmatprep.subr.msk.bf16.mxu1 %vm1167_vm1, %v1051_v12  ;;  %917 = vmatprep.mubr.msk.f32.mxu0 %vm146_vm0, %v114_v19  ;;  %v1063_v26 = vpack.c.bf16 %v411_v24, %v410_v23  ;;  %v138_v27 = vld [vmem:[%s1163_s30 + $0x40] sm:$0xff]  ;;  %v139_v28 = vld [vmem:[%s1163_s30 + $0x48] sm:$0xff]  ;;  %v140_v33 = vld [vmem:[%s1163_s30 + $0x50] sm:$0xff]  ;;  %p1101_p6 = por %p1100_p5, %p1099_p4 }
   0xe   :  { %973 = vmatprep.mubr.msk.f32.mxu1 %vm146_vm0, %v388_v20  ;;  %v412_v29 = vld [vmem:[%s1174_s9 + $0x40] sm:$0xff]  ;;  %v413_v30 = vld [vmem:[%s1174_s9 + $0x48] sm:$0xff]  ;;  %v1021_v31 = vpack.c.bf16 %v139_v28, %v138_v27  ;;  %v141_v34 = vld [vmem:[%s1163_s30 + $0x58] sm:$0xff] }
   0xf   :  { %v1069_v32 = vpack.c.bf16 %v413_v30, %v412_v29  ;;  %v414_v35 = vld [vmem:[%s1174_s9 + $0x50] sm:$0xff]  ;;  %v415_v36 = vld [vmem:[%s1174_s9 + $0x58] sm:$0xff]  ;;  %v1027_v37 = vpack.c.bf16 %v141_v34, %v140_v33  ;;  %v142_v39 = vld [vmem:[%s1163_s30 + $0x60] sm:$0xff]  ;;  %p1102_p7 = pnand %p1101_p6, %p1095_p3 }
  0x10   :  { %v1075_v38 = vpack.c.bf16 %v415_v36, %v414_v35  ;;  %v143_v40 = vld [vmem:[%s1163_s30 + $0x68] sm:$0xff]  ;;  %v416_v41 = vld [vmem:[%s1174_s9 + $0x60] sm:$0xff]  ;;  %v144_v45 = vld [vmem:[%s1163_s30 + $0x70] sm:$0xff] }
  0x11   :  { %v417_v42 = vld [vmem:[%s1174_s9 + $0x68] sm:$0xff]  ;;  %v1033_v43 = vpack.c.bf16 %v143_v40, %v142_v39  ;;  %v145_v46 = vld [vmem:[%s1163_s30 + $0x78] sm:$0xff]  ;;  %v418_v47 = vld [vmem:[%s1174_s9 + $0x70] sm:$0xff] }
  0x12   :  { %v1081_v44 = vpack.c.bf16 %v417_v42, %v416_v41  ;;  %v419_v48 = vld [vmem:[%s1174_s9 + $0x78] sm:$0xff]  ;;  %v1039_v49 = vpack.c.bf16 %v145_v46, %v144_v45  ;;  %v115_v51 = vld [vmem:[%s1203_s11 + $0x8] sm:$0xff]  ;;  %v116_v53 = vld [vmem:[%s1203_s11 + $0x10] sm:$0xff] }
  0x13   :  { %1008 = vmatpush3.bf16.xpose.msk.msra.mxu0 %vm1167_vm1, %v1003_v9  ;;  %v1087_v50 = vpack.c.bf16 %v419_v48, %v418_v47  ;;  %v389_v52 = vld [vmem:[%s1208_s14 + $0x8] sm:$0xff]  ;;  %v390_v54 = vld [vmem:[%s1208_s14 + $0x10] sm:$0xff]  ;;  %v117_v55 = vld [vmem:[%s1203_s11 + $0x18] sm:$0xff] }
  0x14   :  { %1056 = vmatpush3.bf16.xpose.msk.msra.mxu1 %vm1167_vm1, %v1051_v12  ;;  %1011 = vmatprep.subr.msk.bf16.mxu0 %vm1167_vm1, %v1009_v17  ;;  %v391_v56 = vld [vmem:[%s1208_s14 + $0x18] sm:$0xff]  ;;  %v118_v57 = vld [vmem:[%s1203_s11 + $0x20] sm:$0xff]  ;;  %v119_v59 = vld [vmem:[%s1203_s11 + $0x28] sm:$0xff] }
  0x15   :  { %1059 = vmatprep.subr.msk.bf16.mxu1 %vm1167_vm1, %v1057_v18  ;;  %v392_v58 = vld [vmem:[%s1208_s14 + $0x20] sm:$0xff]  ;;  %v393_v60 = vld [vmem:[%s1208_s14 + $0x28] sm:$0xff]  ;;  %v120_v61 = vld [vmem:[%s1203_s11 + $0x30] sm:$0xff] }
  0x16   :  { %v394_v62 = vld [vmem:[%s1208_s14 + $0x30] sm:$0xff]  ;;  %v121_v63 = vld [vmem:[%s1203_s11 + $0x38] sm:$0xff]  ;;  %v122_v1 = vld [vmem:[%s1203_s11 + $0x40] sm:$0xff] }
  0x17   :  { %v395_v0 = vld [vmem:[%s1208_s14 + $0x38] sm:$0xff]  ;;  %v396_v2 = vld [vmem:[%s1208_s14 + $0x40] sm:$0xff]  ;;  %v123_v3 = vld [vmem:[%s1203_s11 + $0x48] sm:$0xff] }
  0x18   :  { %v397_v4 = vld [vmem:[%s1208_s14 + $0x48] sm:$0xff]  ;;  %v124_v5 = vld [vmem:[%s1203_s11 + $0x50] sm:$0xff]  ;;  %v125_v7 = vld [vmem:[%s1203_s11 + $0x58] sm:$0xff] }
  0x19   :  { %v398_v6 = vld [vmem:[%s1208_s14 + $0x50] sm:$0xff]  ;;  %v399_v8 = vld [vmem:[%s1208_s14 + $0x58] sm:$0xff]  ;;  %v126_v9 = vld [vmem:[%s1203_s11 + $0x60] sm:$0xff] }
  0x1a   :  { %v400_v10 = vld [vmem:[%s1208_s14 + $0x60] sm:$0xff]  ;;  %v127_v11 = vld [vmem:[%s1203_s11 + $0x68] sm:$0xff]  ;;  %v128_v13 = vld [vmem:[%s1203_s11 + $0x70] sm:$0xff] }
  0x1b   :  { %1014 = vmatpush3.bf16.xpose.msk.msra.mxu0 %vm1167_vm1, %v1009_v17  ;;  %v401_v12 = vld [vmem:[%s1208_s14 + $0x68] sm:$0xff]  ;;  %v402_v14 = vld [vmem:[%s1208_s14 + $0x70] sm:$0xff]  ;;  %v129_v15 = vld [vmem:[%s1203_s11 + $0x78] sm:$0xff] }
  0x1c   :  { %1062 = vmatpush3.bf16.xpose.msk.msra.mxu1 %vm1167_vm1, %v1057_v18  ;;  %1017 = vmatprep.subr.msk.bf16.mxu0 %vm1167_vm1, %v1015_v25  ;;  %v403_v16 = vld [vmem:[%s1208_s14 + $0x78] sm:$0xff] }
  0x1d   :  { %1065 = vmatprep.subr.msk.bf16.mxu1 %vm1167_vm1, %v1063_v26 }
  0x23   :  { %1020 = vmatpush3.bf16.xpose.msk.msra.mxu0 %vm1167_vm1, %v1015_v25 }
  0x24   :  { %1068 = vmatpush3.bf16.xpose.msk.msra.mxu1 %vm1167_vm1, %v1063_v26  ;;  %1023 = vmatprep.subr.msk.bf16.mxu0 %vm1167_vm1, %v1021_v31 }
  0x25   :  { %1071 = vmatprep.subr.msk.bf16.mxu1 %vm1167_vm1, %v1069_v32 }
  0x2b   :  { %1026 = vmatpush3.bf16.xpose.msk.msra.mxu0 %vm1167_vm1, %v1021_v31 }
  0x2c   :  { %1074 = vmatpush3.bf16.xpose.msk.msra.mxu1 %vm1167_vm1, %v1069_v32  ;;  %1029 = vmatprep.subr.msk.bf16.mxu0 %vm1167_vm1, %v1027_v37 }
  0x2d   :  { %1077 = vmatprep.subr.msk.bf16.mxu1 %vm1167_vm1, %v1075_v38 }
  0x33   :  { %1032 = vmatpush3.bf16.xpose.msk.msra.mxu0 %vm1167_vm1, %v1027_v37 }
  0x34   :  { %1080 = vmatpush3.bf16.xpose.msk.msra.mxu1 %vm1167_vm1, %v1075_v38  ;;  %1035 = vmatprep.subr.msk.bf16.mxu0 %vm1167_vm1, %v1033_v43 }
  0x35   :  { %1083 = vmatprep.subr.msk.bf16.mxu1 %vm1167_vm1, %v1081_v44 }
  0x3b   :  { %1038 = vmatpush3.bf16.xpose.msk.msra.mxu0 %vm1167_vm1, %v1033_v43 }
  0x3c   :  { %1086 = vmatpush3.bf16.xpose.msk.msra.mxu1 %vm1167_vm1, %v1081_v44  ;;  %1041 = vmatprep.subr.msk.bf16.mxu0 %vm1167_vm1, %v1039_v49 }
  0x3d   :  { %1089 = vmatprep.subr.msk.bf16.mxu1 %vm1167_vm1, %v1087_v50 }
  0x43   :  { %1044 = vmatpush3.bf16.xpose.msk.msra.mxu0 %vm1167_vm1, %v1039_v49 }
  0x44   :  { %1092 = vmatpush3.bf16.xpose.msk.msra.mxu1 %vm1167_vm1, %v1087_v50 }
  0x4a   :  { %918 = vmatmul.mubr.msk.f32.vlgmr.msra.gmra.mrb[0].mxu0 %vm146_vm0, %v115_v51 }
  0x4b   :  { %974 = vmatmul.mubr.msk.f32.vlgmr.msra.gmra.mrb[0].mxu1 %vm146_vm0, %v389_v52  ;;  %920 = vmatprep.mubr.msk.f32.mxu0 %vm146_vm0, %v116_v53 }
  0x4c   :  { %976 = vmatprep.mubr.msk.f32.mxu1 %vm146_vm0, %v390_v54 }
  0x4e   :  { %921 = vmatmul.mubr.msk.f32.gmra.mrb[2].mxu0 %vm146_vm0, %v117_v55 }
  0x4f   :  { %977 = vmatmul.mubr.msk.f32.gmra.mrb[2].mxu1 %vm146_vm0, %v391_v56  ;;  %923 = vmatprep.mubr.msk.f32.mxu0 %vm146_vm0, %v118_v57 }
  0x50   :  { %979 = vmatprep.mubr.msk.f32.mxu1 %vm146_vm0, %v392_v58 }
  0x52   :  { %924 = vmatmul.mubr.msk.f32.gmra.mrb[4].mxu0 %vm146_vm0, %v119_v59 }
  0x53   :  { %980 = vmatmul.mubr.msk.f32.gmra.mrb[4].mxu1 %vm146_vm0, %v393_v60  ;;  %926 = vmatprep.mubr.msk.f32.mxu0 %vm146_vm0, %v120_v61 }
  0x54   :  { %982 = vmatprep.mubr.msk.f32.mxu1 %vm146_vm0, %v394_v62 }
  0x56   :  { %927 = vmatmul.mubr.msk.f32.gmra.mrb[6].mxu0 %vm146_vm0, %v121_v63 }
  0x57   :  { %983 = vmatmul.mubr.msk.f32.gmra.mrb[6].mxu1 %vm146_vm0, %v395_v0  ;;  %929 = vmatprep.mubr.msk.f32.mxu0 %vm146_vm0, %v122_v1 }
  0x58   :  { %985 = vmatprep.mubr.msk.f32.mxu1 %vm146_vm0, %v396_v2 }
  0x5a   :  { %930 = vmatmul.mubr.msk.f32.gmra.mrb[8].mxu0 %vm146_vm0, %v123_v3 }
  0x5b   :  { %986 = vmatmul.mubr.msk.f32.gmra.mrb[8].mxu1 %vm146_vm0, %v397_v4  ;;  %932 = vmatprep.mubr.msk.f32.mxu0 %vm146_vm0, %v124_v5 }
  0x5c   :  { %988 = vmatprep.mubr.msk.f32.mxu1 %vm146_vm0, %v398_v6 }
  0x5e   :  { %933 = vmatmul.mubr.msk.f32.gmra.mrb[10].mxu0 %vm146_vm0, %v125_v7 }
  0x5f   :  { %989 = vmatmul.mubr.msk.f32.gmra.mrb[10].mxu1 %vm146_vm0, %v399_v8  ;;  %935 = vmatprep.mubr.msk.f32.mxu0 %vm146_vm0, %v126_v9 }
  0x60   :  { %991 = vmatprep.mubr.msk.f32.mxu1 %vm146_vm0, %v400_v10 }
  0x62   :  { %936 = vmatmul.mubr.msk.f32.gmra.mrb[12].mxu0 %vm146_vm0, %v127_v11 }
  0x63   :  { %992 = vmatmul.mubr.msk.f32.gmra.mrb[12].mxu1 %vm146_vm0, %v401_v12  ;;  %938 = vmatprep.mubr.msk.f32.mxu0 %vm146_vm0, %v128_v13 }
  0x64   :  { %994 = vmatprep.mubr.msk.f32.mxu1 %vm146_vm0, %v402_v14 }
  0x66   :  { %939 = vmatmul.mubr.msk.f32.gmra.mrb[14].mxu0 %vm146_vm0, %v129_v15 }
  0x67   :  { %995 = vmatmul.mubr.msk.f32.gmra.mrb[14].mxu1 %vm146_vm0, %v403_v16 }
 0x11d   :  { %v919_v17 = vpop.f32.mrb[0].mxu0 }
 0x11e   :  { %v975_v18 = vpop.f32.mrb[0].mxu1  ;;  %v309_v19 = vpop.f32.mrb[1].mxu0 }
 0x11f   :  { %v662_v20 = vsub.f32 %v919_v17, %v975_v18  ;;  %v582_v21 = vpop.f32.mrb[1].mxu1 }
 0x120   :  { %v661_v22 = vsub.f32 %v309_v19, %v582_v21 }
 0x121   :  { %v678_v23 = vmul.f32 %v662_v20, %v662_v20  ;;  %v922_v24 = vpop.f32.mrb[2].mxu0 }
 0x122   :  { %v677_v25 = vmul.f32 %v661_v22, %v661_v22  ;;  %v978_v26 = vpop.f32.mrb[2].mxu1  ;;  %v319_v27 = vpop.f32.mrb[3].mxu0 }
 0x123   :  { %v664_v28 = vsub.f32 %v922_v24, %v978_v26  ;;  %v592_v29 = vpop.f32.mrb[3].mxu1 }
 0x124   :  { %v693_v30 = vadd.f32 %v678_v23, %v677_v25  ;;  %v663_v31 = vsub.f32 %v319_v27, %v592_v29 }
 0x125   :  { %v680_v32 = vmul.f32 %v664_v28, %v664_v28  ;;  %v925_v33 = vpop.f32.mrb[4].mxu0 }
 0x126   :  { %v679_v34 = vmul.f32 %v663_v31, %v663_v31  ;;  %v981_v35 = vpop.f32.mrb[4].mxu1  ;;  %v329_v36 = vpop.f32.mrb[5].mxu0  ;;  %v708_v31 = vstv %s113_s17 }
 0x127   :  { %v666_v37 = vsub.f32 %v925_v33, %v981_v35  ;;  %v602_v38 = vpop.f32.mrb[5].mxu1 }
 0x128   :  { %v694_v39 = vadd.f32 %v680_v32, %v679_v34  ;;  %v665_v40 = vsub.f32 %v329_v36, %v602_v38 }
 0x129   :  { %v682_v41 = vmul.f32 %v666_v37, %v666_v37  ;;  %v928_v42 = vpop.f32.mrb[6].mxu0 }
 0x12a   :  { %v701_v43 = vadd.f32 %v694_v39, %v693_v30  ;;  %v681_v44 = vmul.f32 %v665_v40, %v665_v40  ;;  %v984_v45 = vpop.f32.mrb[6].mxu1  ;;  %v339_v46 = vpop.f32.mrb[7].mxu0 }
 0x12b   :  { %v668_v47 = vsub.f32 %v928_v42, %v984_v45  ;;  %v612_v48 = vpop.f32.mrb[7].mxu1 }
 0x12c   :  { %v695_v49 = vadd.f32 %v682_v41, %v681_v44  ;;  %v667_v50 = vsub.f32 %v339_v46, %v612_v48 }
 0x12d   :  { %v684_v51 = vmul.f32 %v668_v47, %v668_v47  ;;  %v931_v52 = vpop.f32.mrb[8].mxu0 }
 0x12e   :  { %v683_v53 = vmul.f32 %v667_v50, %v667_v50  ;;  %v987_v54 = vpop.f32.mrb[8].mxu1  ;;  %v349_v55 = vpop.f32.mrb[9].mxu0 }
 0x12f   :  { %v670_v56 = vsub.f32 %v931_v52, %v987_v54  ;;  %v622_v57 = vpop.f32.mrb[9].mxu1 }
 0x130   :  { %v696_v58 = vadd.f32 %v684_v51, %v683_v53  ;;  %v669_v59 = vsub.f32 %v349_v55, %v622_v57 }
 0x131   :  { %v686_v60 = vmul.f32 %v670_v56, %v670_v56  ;;  %v934_v61 = vpop.f32.mrb[10].mxu0 }
 0x132   :  { %v702_v62 = vadd.f32 %v696_v58, %v695_v49  ;;  %v685_v63 = vmul.f32 %v669_v59, %v669_v59  ;;  %v990_v0 = vpop.f32.mrb[10].mxu1  ;;  %v359_v1 = vpop.f32.mrb[11].mxu0 }
 0x133   :  { %v672_v2 = vsub.f32 %v934_v61, %v990_v0  ;;  %v632_v3 = vpop.f32.mrb[11].mxu1 }
 0x134   :  { %v697_v4 = vadd.f32 %v686_v60, %v685_v63  ;;  %v671_v5 = vsub.f32 %v359_v1, %v632_v3  ;;  %v705_v6 = vadd.f32 %v702_v62, %v701_v43 }
 0x135   :  { %v688_v7 = vmul.f32 %v672_v2, %v672_v2  ;;  %v937_v8 = vpop.f32.mrb[12].mxu0 }
 0x136   :  { %v687_v9 = vmul.f32 %v671_v5, %v671_v5  ;;  %v993_v10 = vpop.f32.mrb[12].mxu1  ;;  %v369_v11 = vpop.f32.mrb[13].mxu0 }
 0x137   :  { %v674_v12 = vsub.f32 %v937_v8, %v993_v10  ;;  %v642_v13 = vpop.f32.mrb[13].mxu1 }
 0x138   :  { %v698_v14 = vadd.f32 %v688_v7, %v687_v9  ;;  %v673_v15 = vsub.f32 %v369_v11, %v642_v13 }
 0x139   :  { %v690_v16 = vmul.f32 %v674_v12, %v674_v12  ;;  %v940_v17 = vpop.f32.mrb[14].mxu0 }
 0x13a   :  { %v703_v18 = vadd.f32 %v698_v14, %v697_v4  ;;  %v689_v19 = vmul.f32 %v673_v15, %v673_v15  ;;  %v996_v20 = vpop.f32.mrb[14].mxu1  ;;  %v379_v21 = vpop.f32.mrb[15].mxu0 }
 0x13b   :  { %v676_v22 = vsub.f32 %v940_v17, %v996_v20  ;;  %v652_v23 = vpop.f32.mrb[15].mxu1 }
 0x13c   :  { %v699_v24 = vadd.f32 %v690_v16, %v689_v19  ;;  %v675_v25 = vsub.f32 %v379_v21, %v652_v23 }
 0x13d   :  { %v692_v26 = vmul.f32 %v676_v22, %v676_v22 }
 0x13e   :  { %v691_v27 = vmul.f32 %v675_v25, %v675_v25 }
 0x140   :  { %v700_v28 = vadd.f32 %v692_v26, %v691_v27 }
 0x142   :  { %v704_v29 = vadd.f32 %v700_v28, %v699_v24 }
 0x144   :  { %v706_v30 = vadd.f32 %v704_v29, %v703_v18 }
 0x146   :  { %v707_v32 = vadd.f32 %v706_v30, %v705_v6 }
 0x148   :  { %v709_v33 = vmul.f32 %v708_v31, %v707_v32 }
 0x14a   :  { %710 = vst [vmem:[#allocation5] sm:$0xff] %v709_v33 }
 0x14b   :  { %1105 = shalt.err (!%p1102_p7)
}
 0x14c   :  { %s1106_s21 = scalar_lea.hbm %s1370_s6, 128 }
 0x14d   :  { %p1107_p8 = scmp.ne.s32.totalorder %s1370_s6, %s1106_s21  ;;  %p1110_p9 = scmp.lt.u32.totalorder %s1106_s21, %s1370_s6 }
 0x14f   :  { %p1112_p10 = pnand %p1110_p9, %p1107_p8 }
 0x151   :  { %1115 = shalt.err (!%p1112_p10)
}
 0x152   :  { %720 = dma.vmem_to_hbm [thread:$0]  %s718_s19, 128, %s1370_s6, [#allocation6]  }
 0x153   :  { %1116 = dma.done.wait [#allocation6], 128  }
 0x154   :  { %1117 = vsyncadd [#allocation6], 4294967168 }
 0x155   :  { %724 = vsyncpa [#allocation6], 1 }

</bundles_post_ra>
